<compile_context>
chip_gen: v6e
topology: v6e:2x2x1
jax: 0.10.0
libtpu: 0.0.40
codegen_flags: <defaults>
</compile_context>

<pallas_src>
import jax
import jax.numpy as jnp
from jax.experimental import pallas as pl
from jax.experimental.pallas import tpu as pltpu


def _fold_axis0(x, op):
    """Reduce `x` over its (static) leading axis with a log-depth tree of
    static slices + elementwise ops.  Keeps the lane/sublane layout untouched,
    which is the most robust path through the Mosaic lowering (and gives a
    log-depth dependency chain instead of a serial accumulate)."""
    while x.shape[0] > 1:
        n = x.shape[0]
        half = n // 2
        lo, hi, tail = x[:half], x[half:2 * half], x[2 * half:]
        x = op(lo, hi)
        if tail.shape[0]:                      # odd leftover slice
            x = jnp.concatenate([x, tail], axis=0)
    return x[0]


def attention_kernel(enc_ref, dec_ref, w_ref, b_ref, out_ref):
    # enc_ref: (S, TB, 2H)  seq-major encoder slab (no wrapper transpose)
    # dec_ref: (TB, H)      last-layer decoder hidden state
    # w_ref:   (2H, H)      dense weight, pre-transposed
    # b_ref:   (1, H)       dense bias
    # out_ref: (TB, H)      lane-dense attention vectors
    s, tb, k2 = enc_ref.shape
    h = w_ref.shape[1]

    # dense(encoder_output): fold (seq, batch-block) into the matmul M dim and
    # run ONE MXU matmul.  TB is a multiple of 8, so both reshapes are
    # layout-preserving relabels (no data movement).
    enc2d = enc_ref[...].reshape(s * tb, k2)                          # (S*TB, 2H)
    proj = (jnp.dot(enc2d, w_ref[...],
                    preferred_element_type=jnp.float32)
            + b_ref[...]).reshape(s, tb, h)                           # (S, TB, H)

    # energy[s, b] = <decoder_hidden[b], proj[s, b]>  -- VPU mul + lane reduce,
    # no proj.T and no M=1 matmuls.
    energy = jnp.sum(proj * dec_ref[...], axis=-1, keepdims=True)     # (S, TB, 1)

    # Numerically stable softmax over the sequence axis; normalization is
    # deferred to a single per-row reciprocal at the end.
    m = _fold_axis0(energy, jnp.maximum)                              # (TB, 1)
    e = jnp.exp(energy - m)                                           # (S, TB, 1)
    denom = _fold_axis0(e, jnp.add)                                   # (TB, 1)

    # Unnormalized attention vector: sum_s e[s, b] * proj[s, b, :].
    attn = _fold_axis0(e * proj, jnp.add)                             # (TB, H)

    inv = pl.reciprocal(denom, approx=True)                           # EUP, ~free
    out_ref[...] = (attn * inv).astype(out_ref.dtype)


def _pick_tb(batch, seq, hidden):
    """Batch rows folded into each grid step: a multiple of 8 (f32 sublane
    tile), grown until the projection matmul M = tb*seq reaches the 256 MXU
    granule, while keeping the double-buffered encoder tile small enough for
    v7x's 64 MiB VMEM."""
    b_pad = ((batch + 7) // 8) * 8            # batch padded to the sublane tile
    enc_row_bytes = seq * 2 * hidden * 4      # one f32 batch row of encoder_output
    tb = 8
    while (tb * 2 <= b_pad and b_pad % (tb * 2) == 0       # keep the grid exact
           and tb * seq < 256                              # MXU M-granule target
           and 2 * (2 * tb) * enc_row_bytes <= 8 * 1024 * 1024):
        tb *= 2
    return tb, b_pad


@jax.jit
def attention_forward(decoder_hidden, encoder_output, w, b):
    """decoder_hidden: (L, B, H), encoder_output: (S, B, 2H) (seq-major, as in
    PyTorch), w: (H, 2H), b: (H,).  Returns (1, B, H) like the PyTorch module."""
    num_layers, batch, hidden = decoder_hidden.shape
    seq, batch2, hidden2 = encoder_output.shape
    assert batch2 == batch and hidden2 == 2 * hidden

    tb, b_pad = _pick_tb(batch, seq, hidden)

    dec = decoder_hidden[-1]                              # (B, H)
    enc = encoder_output                                  # (S, B, 2H): no HBM transpose
    if b_pad != batch:
        # Only when B is not a multiple of 8: pad so every batch block is
        # sublane-aligned (padded rows are sliced off below; padded columns
        # never mix with real ones since every op is independent per batch).
        enc = jnp.pad(enc, ((0, 0), (0, b_pad - batch), (0, 0)))
        dec = jnp.pad(dec, ((0, b_pad - batch), (0, 0)))
    wt = jnp.transpose(w)                                 # (2H, H), tiny
    bias = b[None, :]                                     # (1, H)

    # VMEM budget: double-buffered enc/dec/out blocks + resident weight +
    # in-kernel temporaries; clamp under v7x's 64 MiB physical VMEM.
    enc_block_bytes = seq * tb * 2 * hidden * 4
    vmem_est = (5 * enc_block_bytes
                + 2 * (2 * hidden) * hidden * 4
                + 8 * tb * hidden * 4)
    vmem_limit = int(min(max(2 * vmem_est, 16 * 1024 * 1024), 60 * 1024 * 1024))

    out = pl.pallas_call(
        attention_kernel,
        out_shape=jax.ShapeDtypeStruct((b_pad, hidden), jnp.float32),
        grid_spec=pltpu.PrefetchScalarGridSpec(
            num_scalar_prefetch=0,
            grid=(b_pad // tb,),
            in_specs=[
                pl.BlockSpec((seq, tb, 2 * hidden), lambda i: (0, i, 0)),
                pl.BlockSpec((tb, hidden), lambda i: (i, 0)),
                pl.BlockSpec((2 * hidden, hidden), lambda i: (0, 0)),
                pl.BlockSpec((1, hidden), lambda i: (0, 0)),
            ],
            out_specs=pl.BlockSpec((tb, hidden), lambda i: (i, 0)),
        ),
        compiler_params=pltpu.CompilerParams(
            dimension_semantics=("parallel",),     # batch blocks shard across v7x's 2 TCs
            vmem_limit_bytes=vmem_limit,
        ),
    )(enc, dec, wt, bias)

    return out[None, :batch, :]                           # (1, B, H)


if __name__ == "__main__":
    key = jax.random.PRNGKey(0)
    hidden, batch, seq, num_layers = 32, 2, 8, 2

    k1, k2, k3, k4 = jax.random.split(key, 4)
    decoder_hidden = jax.random.normal(k1, (num_layers, batch, hidden), jnp.float32)
    encoder_output = jax.random.normal(k2, (seq, batch, 2 * hidden), jnp.float32)
    # nn.Linear(2H, H) default init: U(-1/sqrt(2H), 1/sqrt(2H))
    bound = 1.0 / (2 * hidden) ** 0.5
    w = jax.random.uniform(k3, (hidden, 2 * hidden), jnp.float32, -bound, bound)
    b = jax.random.uniform(k4, (hidden,), jnp.float32, -bound, bound)

    out = attention_forward(decoder_hidden, encoder_output, w, b)
    out = jax.block_until_ready(out)

    # Pure-JAX reference mirroring the PyTorch forward exactly.
    proj = jnp.einsum("sbk,hk->sbh", encoder_output, w) + b        # dense(enc_out)
    proj_b = jnp.transpose(proj, (1, 2, 0))                        # (B, H, S)
    dec = decoder_hidden[-1][:, None, :]                           # (B, 1, H)
    energy = jnp.einsum("bqh,bhs->bqs", dec, proj_b)               # (B, 1, S)
    weights = jax.nn.softmax(energy, axis=-1)
    ref = jnp.einsum("bqs,bsh->bqh", weights, jnp.transpose(proj_b, (0, 2, 1)))
    ref = jnp.transpose(ref, (1, 0, 2))                            # (1, B, H)

    assert out.shape == (1, batch, hidden)
    # Tolerance relaxed slightly for the approx (EUP) reciprocal in the softmax.
    assert jnp.allclose(out, ref, atol=2e-3, rtol=2e-3)
    print("KERNEL_OK")
</pallas_src>

<mosaic_0001>
module attributes {stable_mosaic.version = 11 : i64} {
  func.func @attention_kernel(%arg0: i32, %arg1: memref<8x8x64xf32, #tpu.memory_space<vmem>>, %arg2: memref<8x32xf32, #tpu.memory_space<vmem>>, %arg3: memref<64x32xf32, #tpu.memory_space<vmem>>, %arg4: memref<1x32xf32, #tpu.memory_space<vmem>>, %arg5: memref<8x32xf32, #tpu.memory_space<vmem>>) attributes {dimension_semantics = [#tpu.dimension_semantics<parallel>], iteration_bounds = array<i64: 1>, scalar_prefetch = 0 : i64, scratch_operands = 0 : i64, tpu.core_type = #tpu.core_type<tc>, window_params = [{transform_indices = @transform_0, window_bounds = array<i64: 8, 8, 64>}, {transform_indices = @transform_1, window_bounds = array<i64: 8, 32>}, {pipeline_mode = #tpu.pipeline_mode<synchronous>, transform_indices = @transform_2, window_bounds = array<i64: 64, 32>}, {pipeline_mode = #tpu.pipeline_mode<synchronous>, transform_indices = @transform_3, window_bounds = array<i64: 1, 32>}, {transform_indices = @transform_4, window_bounds = array<i64: 8, 32>}]} {
    %c0 = arith.constant 0 : index
    %c0_0 = arith.constant 0 : index
    %c0_1 = arith.constant 0 : index
    %0 = vector.load %arg1[%c0, %c0_0, %c0_1] : memref<8x8x64xf32, #tpu.memory_space<vmem>>, vector<8x8x64xf32>
    %1 = vector.shape_cast %0 : vector<8x8x64xf32> to vector<64x64xf32>
    %c0_2 = arith.constant 0 : index
    %c0_3 = arith.constant 0 : index
    %2 = vector.load %arg3[%c0_2, %c0_3] : memref<64x32xf32, #tpu.memory_space<vmem>>, vector<64x32xf32>
    %cst = arith.constant dense<0.000000e+00> : vector<64x32xf32>
    %3 = tpu.matmul %1, %2, %cst {dimension_numbers = #tpu.dot_dimension_numbers<[1], [0], [0], [1], [0, 0, 1, 1], [], []>} : vector<64x64xf32>, vector<64x32xf32>, vector<64x32xf32> -> vector<64x32xf32>
    %c0_4 = arith.constant 0 : index
    %c0_5 = arith.constant 0 : index
    %4 = vector.load %arg4[%c0_4, %c0_5] : memref<1x32xf32, #tpu.memory_space<vmem>>, vector<1x32xf32>
    %5 = vector.broadcast %4 : vector<1x32xf32> to vector<64x32xf32>
    %6 = arith.addf %3, %5 : vector<64x32xf32>
    %7 = vector.shape_cast %6 : vector<64x32xf32> to vector<8x8x32xf32>
    %c0_6 = arith.constant 0 : index
    %c0_7 = arith.constant 0 : index
    %8 = vector.load %arg2[%c0_6, %c0_7] : memref<8x32xf32, #tpu.memory_space<vmem>>, vector<8x32xf32>
    %9 = vector.shape_cast %8 : vector<8x32xf32> to vector<1x8x32xf32>
    %10 = vector.broadcast %9 : vector<1x8x32xf32> to vector<8x8x32xf32>
    %11 = arith.mulf %7, %10 : vector<8x8x32xf32>
    %cst_8 = arith.constant dense<0.000000e+00> : vector<8x8xf32>
    %12 = vector.multi_reduction <add>, %11, %cst_8 [2] : vector<8x8x32xf32> to vector<8x8xf32>
    %13 = vector.shape_cast %12 : vector<8x8xf32> to vector<8x8x1xf32>
    %14 = vector.extract_strided_slice %13 {offsets = [0, 0, 0], sizes = [4, 8, 1], strides = [1, 1, 1]} : vector<8x8x1xf32> to vector<4x8x1xf32>
    %15 = vector.extract_strided_slice %13 {offsets = [4, 0, 0], sizes = [4, 8, 1], strides = [1, 1, 1]} : vector<8x8x1xf32> to vector<4x8x1xf32>
    %16 = arith.maximumf %14, %15 : vector<4x8x1xf32>
    %17 = vector.extract_strided_slice %16 {offsets = [0, 0, 0], sizes = [2, 8, 1], strides = [1, 1, 1]} : vector<4x8x1xf32> to vector<2x8x1xf32>
    %18 = vector.extract_strided_slice %16 {offsets = [2, 0, 0], sizes = [2, 8, 1], strides = [1, 1, 1]} : vector<4x8x1xf32> to vector<2x8x1xf32>
    %19 = arith.maximumf %17, %18 : vector<2x8x1xf32>
    %20 = vector.extract_strided_slice %19 {offsets = [0, 0, 0], sizes = [1, 8, 1], strides = [1, 1, 1]} : vector<2x8x1xf32> to vector<1x8x1xf32>
    %21 = vector.extract_strided_slice %19 {offsets = [1, 0, 0], sizes = [1, 8, 1], strides = [1, 1, 1]} : vector<2x8x1xf32> to vector<1x8x1xf32>
    %22 = arith.maximumf %20, %21 : vector<1x8x1xf32>
    %23 = vector.shape_cast %22 : vector<1x8x1xf32> to vector<8x1xf32>
    %24 = vector.shape_cast %23 : vector<8x1xf32> to vector<1x8x1xf32>
    %25 = vector.broadcast %24 : vector<1x8x1xf32> to vector<8x8x1xf32>
    %26 = arith.subf %13, %25 : vector<8x8x1xf32>
    %27 = math.exp %26 : vector<8x8x1xf32>
    %28 = vector.extract_strided_slice %27 {offsets = [0, 0, 0], sizes = [4, 8, 1], strides = [1, 1, 1]} : vector<8x8x1xf32> to vector<4x8x1xf32>
    %29 = vector.extract_strided_slice %27 {offsets = [4, 0, 0], sizes = [4, 8, 1], strides = [1, 1, 1]} : vector<8x8x1xf32> to vector<4x8x1xf32>
    %30 = arith.addf %28, %29 : vector<4x8x1xf32>
    %31 = vector.extract_strided_slice %30 {offsets = [0, 0, 0], sizes = [2, 8, 1], strides = [1, 1, 1]} : vector<4x8x1xf32> to vector<2x8x1xf32>
    %32 = vector.extract_strided_slice %30 {offsets = [2, 0, 0], sizes = [2, 8, 1], strides = [1, 1, 1]} : vector<4x8x1xf32> to vector<2x8x1xf32>
    %33 = arith.addf %31, %32 : vector<2x8x1xf32>
    %34 = vector.extract_strided_slice %33 {offsets = [0, 0, 0], sizes = [1, 8, 1], strides = [1, 1, 1]} : vector<2x8x1xf32> to vector<1x8x1xf32>
    %35 = vector.extract_strided_slice %33 {offsets = [1, 0, 0], sizes = [1, 8, 1], strides = [1, 1, 1]} : vector<2x8x1xf32> to vector<1x8x1xf32>
    %36 = arith.addf %34, %35 : vector<1x8x1xf32>
    %37 = vector.shape_cast %36 : vector<1x8x1xf32> to vector<8x1xf32>
    %38 = vector.broadcast %27 : vector<8x8x1xf32> to vector<8x8x32xf32>
    %39 = arith.mulf %38, %7 : vector<8x8x32xf32>
    %40 = vector.extract_strided_slice %39 {offsets = [0, 0, 0], sizes = [4, 8, 32], strides = [1, 1, 1]} : vector<8x8x32xf32> to vector<4x8x32xf32>
    %41 = vector.extract_strided_slice %39 {offsets = [4, 0, 0], sizes = [4, 8, 32], strides = [1, 1, 1]} : vector<8x8x32xf32> to vector<4x8x32xf32>
    %42 = arith.addf %40, %41 : vector<4x8x32xf32>
    %43 = vector.extract_strided_slice %42 {offsets = [0, 0, 0], sizes = [2, 8, 32], strides = [1, 1, 1]} : vector<4x8x32xf32> to vector<2x8x32xf32>
    %44 = vector.extract_strided_slice %42 {offsets = [2, 0, 0], sizes = [2, 8, 32], strides = [1, 1, 1]} : vector<4x8x32xf32> to vector<2x8x32xf32>
    %45 = arith.addf %43, %44 : vector<2x8x32xf32>
    %46 = vector.extract_strided_slice %45 {offsets = [0, 0, 0], sizes = [1, 8, 32], strides = [1, 1, 1]} : vector<2x8x32xf32> to vector<1x8x32xf32>
    %47 = vector.extract_strided_slice %45 {offsets = [1, 0, 0], sizes = [1, 8, 32], strides = [1, 1, 1]} : vector<2x8x32xf32> to vector<1x8x32xf32>
    %48 = arith.addf %46, %47 : vector<1x8x32xf32>
    %49 = vector.shape_cast %48 : vector<1x8x32xf32> to vector<8x32xf32>
    %50 = tpu.reciprocal %37 {approx = true} : vector<8x1xf32> -> vector<8x1xf32>
    %51 = vector.broadcast %50 : vector<8x1xf32> to vector<8x32xf32>
    %52 = arith.mulf %49, %51 : vector<8x32xf32>
    %c0_9 = arith.constant 0 : index
    %c0_10 = arith.constant 0 : index
    %53 = vector.load %arg5[%c0_9, %c0_10] : memref<8x32xf32, #tpu.memory_space<vmem>>, vector<8x32xf32>
    tpu.vector_store %arg5[%c0_9, %c0_10], %52 {strides = array<i32>} : memref<8x32xf32, #tpu.memory_space<vmem>>, vector<8x32xf32>,
    return
  }
  func.func @transform_0(%arg0: i32) -> (i32, i32, i32) {
    %c0_i32 = arith.constant 0 : i32
    %c0_i32_0 = arith.constant 0 : i32
    %c0_i32_1 = arith.constant 0 : i32
    return %c0_i32, %arg0, %c0_i32_0 : i32, i32, i32
  }
  func.func @transform_1(%arg0: i32) -> (i32, i32) {
    %c0_i32 = arith.constant 0 : i32
    %c0_i32_0 = arith.constant 0 : i32
    return %arg0, %c0_i32 : i32, i32
  }
  func.func @transform_2(%arg0: i32) -> (i32, i32) {
    %c0_i32 = arith.constant 0 : i32
    %c0_i32_0 = arith.constant 0 : i32
    %c0_i32_1 = arith.constant 0 : i32
    return %c0_i32, %c0_i32_0 : i32, i32
  }
  func.func @transform_3(%arg0: i32) -> (i32, i32) {
    %c0_i32 = arith.constant 0 : i32
    %c0_i32_0 = arith.constant 0 : i32
    %c0_i32_1 = arith.constant 0 : i32
    return %c0_i32, %c0_i32_0 : i32, i32
  }
  func.func @transform_4(%arg0: i32) -> (i32, i32) {
    %c0_i32 = arith.constant 0 : i32
    %c0_i32_0 = arith.constant 0 : i32
    return %arg0, %c0_i32 : i32, i32
  }
}

</mosaic_0001>

<bundles_post_ra>
// kernel: attention_forward.1
= control target key start
LH: loop header
LB: loop body
LE: loop exit
PB: predicated region body
PF: predicated region fallthrough
CT: control target
= control target key end

     0   :  { %vm40_vm0 = vcmask 523264   ;;  %vm179_vm1 = vcmask 261120   ;;  %s482_s2 = inlined_call_operand.vmem [shape: f32[64,32], index: 2, kind: input, shape index: {}]   ;;  %s483_s0 = inlined_call_operand.vmem [shape: f32[8,8,64], index: 0, kind: input, shape index: {}]   ;;  %s484_s3 = inlined_call_operand.vmem [shape: f32[1,32], index: 3, kind: input, shape index: {}]   ;;  %s485_s1 = inlined_call_operand.vmem [shape: f32[8,32], index: 1, kind: input, shape index: {}]   ;;  %s486_s4 = inlined_call_operand.vmem [shape: f32[8,32], index: 4, kind: output, shape index: {}]  }
   0x1   :  { %v32_v0 = vld [vmem:[%s482_s2 + $0x38] sm:$0xff]  ;;  %v31_v1 = vld [vmem:[%s482_s2 + $0x30] sm:$0xff]  ;;  %v30_v2 = vld [vmem:[%s482_s2 + $0x28] sm:$0xff] }
   0x2   :  { %289 = vmatprep.subr.mxu0 %v32_v0  ;;  %317 = vmatprep.subr.mxu1 %v32_v0  ;;  %v29_v3 = vld [vmem:[%s482_s2 + $0x20] sm:$0xff]  ;;  %v28_v4 = vld [vmem:[%s482_s2 + $0x18] sm:$0xff]  ;;  %v27_v5 = vld [vmem:[%s482_s2 + $0x10] sm:$0xff] }
   0x3   :  { %290 = vmatpush3.msra.mxu0 %v32_v0  ;;  %325 = vmatpush3.msra.mxu1 %v32_v0  ;;  %v26_v6 = vld [vmem:[%s482_s2 + $0x8] sm:$0xff]  ;;  %v25_v7 = vld [vmem:[%s482_s2] sm:$0xff]  ;;  %v19_v12 = vld [vmem:[%s483_s0 + $0x10] sm:$0xff] }
   0x4   :  { %291 = vmatprep.subr.mxu0 %v31_v1  ;;  %318 = vmatprep.subr.mxu1 %v31_v1  ;;  %v17_v8 = vld [vmem:[%s483_s0] sm:$0xff]  ;;  %v18_v10 = vld [vmem:[%s483_s0 + $0x8] sm:$0xff]  ;;  %v23_v13 = vld [vmem:[%s483_s0 + $0x30] sm:$0xff] }
   0x5   :  { %292 = vmatpush3.msra.mxu0 %v31_v1  ;;  %326 = vmatpush3.msra.mxu1 %v31_v1  ;;  %v21_v9 = vld [vmem:[%s483_s0 + $0x20] sm:$0xff]  ;;  %v22_v11 = vld [vmem:[%s483_s0 + $0x28] sm:$0xff]  ;;  %v20_v14 = vld [vmem:[%s483_s0 + $0x18] sm:$0xff] }
   0x6   :  { %293 = vmatprep.subr.mxu0 %v30_v2  ;;  %319 = vmatprep.subr.mxu1 %v30_v2  ;;  %v24_v15 = vld [vmem:[%s483_s0 + $0x38] sm:$0xff]  ;;  %v264_v16 = vld [vmem:[%s484_s3] ss:$0 sm:$0xff] }
   0x7   :  { %294 = vmatpush3.msra.mxu0 %v30_v2  ;;  %327 = vmatpush3.msra.mxu1 %v30_v2  ;;  %v170_v19 = vld [vmem:[%s485_s1] sm:$0xff] }
   0x8   :  { %295 = vmatprep.subr.mxu0 %v29_v3  ;;  %320 = vmatprep.subr.mxu1 %v29_v3 }
   0x9   :  { %296 = vmatpush3.msra.mxu0 %v29_v3  ;;  %328 = vmatpush3.msra.mxu1 %v29_v3 }
   0xa   :  { %297 = vmatprep.subr.mxu0 %v28_v4  ;;  %321 = vmatprep.subr.mxu1 %v28_v4 }
   0xb   :  { %298 = vmatpush3.msra.mxu0 %v28_v4  ;;  %329 = vmatpush3.msra.mxu1 %v28_v4 }
   0xc   :  { %299 = vmatprep.subr.mxu0 %v27_v5  ;;  %322 = vmatprep.subr.mxu1 %v27_v5 }
   0xd   :  { %300 = vmatpush3.msra.mxu0 %v27_v5  ;;  %330 = vmatpush3.msra.mxu1 %v27_v5 }
   0xe   :  { %301 = vmatprep.subr.mxu0 %v26_v6  ;;  %323 = vmatprep.subr.mxu1 %v26_v6 }
   0xf   :  { %302 = vmatpush3.msra.mxu0 %v26_v6  ;;  %331 = vmatpush3.msra.mxu1 %v26_v6 }
  0x10   :  { %303 = vmatprep.subr.mxu0 %v25_v7  ;;  %324 = vmatprep.subr.mxu1 %v25_v7 }
  0x11   :  { %304 = vmatpush3.msra.mxu0 %v25_v7  ;;  %332 = vmatpush3.msra.mxu1 %v25_v7 }
  0x12   :  { %305 = vmatprep.mubr.msk.f32.mxu0 %vm40_vm0, %v17_v8  ;;  %311 = vmatprep.mubr.msk.f32.mxu1 %vm40_vm0, %v21_v9 }
  0x13   :  { %306 = vmatmul.mubr.msk.f32.vlgmr.msra.gmra.mxu0 %vm40_vm0, %v18_v10  ;;  %312 = vmatmul.mubr.msk.f32.vlgmr.msra.gmra.mxu1 %vm40_vm0, %v22_v11 }
  0x14   :  { %308 = vmatprep.mubr.msk.f32.mxu0 %vm40_vm0, %v19_v12  ;;  %314 = vmatprep.mubr.msk.f32.mxu1 %vm40_vm0, %v23_v13 }
  0x17   :  { %309 = vmatmul.mubr.msk.f32.gmra.mxu0 %vm40_vm0, %v20_v14  ;;  %315 = vmatmul.mubr.msk.f32.gmra.mxu1 %vm40_vm0, %v24_v15 }
  0xd3   :  { %v307_v17 = vpop.f32.mrf.mxu0  ;;  %v313_v18 = vpop.f32.mrf.mxu1 }
  0xd4   :  { %v438_v20 = vadd.f32 %v307_v17, %v264_v16  ;;  %v440_v21 = vadd.f32 %v313_v18, %v264_v16 }
  0xd5   :  { %v131_v22 = vpop.f32.mrf.mxu0  ;;  %v151_v23 = vpop.f32.mrf.mxu1 }
  0xd6   :  { %v442_v24 = vadd.f32 %v264_v16, %v131_v22  ;;  %v176_v25 = vmul.f32 %v170_v19, %v440_v21  ;;  %v172_v26 = vmul.f32 %v170_v19, %v438_v20  ;;  %v446_v27 = vadd.f32 %v264_v16, %v151_v23 }
  0xd7   :  { %v310_v28 = vpop.f32.mrf.mxu0  ;;  %v316_v29 = vpop.f32.mrf.mxu1 }
  0xd8   :  { %v448_v30 = vadd.f32 %v310_v28, %v264_v16  ;;  %v195_v31 = vsel %vm179_vm1, %v176_v25, 0.0  ;;  %v183_v32 = vsel %vm179_vm1, %v172_v26, 0.0  ;;  %v171_v35 = vmul.f32 %v170_v19, %v442_v24 }
  0xd9   :  { %196 = vadd.xlane.f32.xlu1 %v195_v31  ;;  %184 = vadd.xlane.f32.xlu0 %v183_v32  ;;  %v141_v33 = vpop.f32.mrf.mxu0  ;;  %v161_v34 = vpop.f32.mrf.mxu1  ;;  %v456_v38 = vadd.f32 %v316_v29, %v264_v16  ;;  %v175_v39 = vmul.f32 %v170_v19, %v446_v27 }
  0xda   :  { %v453_v36 = vadd.f32 %v264_v16, %v141_v33  ;;  %v174_v37 = vmul.f32 %v170_v19, %v448_v30  ;;  %v459_v40 = vadd.f32 %v264_v16, %v161_v34  ;;  %v180_v42 = vsel %vm179_vm1, %v171_v35, 0.0 }
  0xdb   :  { %v192_v45 = vsel %vm179_vm1, %v175_v39, 0.0  ;;  %v178_v46 = vmul.f32 %v170_v19, %v456_v38 }
  0xdc   :  { %v189_v41 = vsel %vm179_vm1, %v174_v37, 0.0  ;;  %v173_v43 = vmul.f32 %v170_v19, %v453_v36  ;;  %v177_v47 = vmul.f32 %v170_v19, %v459_v40 }
  0xdd   :  { %190 = vadd.xlane.f32.xlu1 %v189_v41  ;;  %181 = vadd.xlane.f32.xlu0 %v180_v42  ;;  %v201_v48 = vsel %vm179_vm1, %v178_v46, 0.0 }
  0xde   :  { %v186_v44 = vsel %vm179_vm1, %v173_v43, 0.0  ;;  %v198_v49 = vsel %vm179_vm1, %v177_v47, 0.0 }
  0xe1   :  { %187 = vadd.xlane.f32.xlu1 %v186_v44  ;;  %193 = vadd.xlane.f32.xlu0 %v192_v45 }
  0xe5   :  { %202 = vadd.xlane.f32.xlu1 %v201_v48  ;;  %199 = vadd.xlane.f32.xlu0 %v198_v49 }
 0x162   :  { %v197_v50 = vpop.xlane.xlu1 %196  ;;  %v185_v51 = vpop.xlane.xlu0 %184 }
 0x163   :  { %v205_v58 = vmax.f32 %v185_v51, %v197_v50 }
 0x166   :  { %v191_v52 = vpop.xlane.xlu1 %190  ;;  %v182_v53 = vpop.xlane.xlu0 %181 }
 0x16a   :  { %v188_v54 = vpop.xlane.xlu1 %187  ;;  %v194_v55 = vpop.xlane.xlu0 %193 }
 0x16b   :  { %v204_v59 = vmax.f32 %v182_v53, %v194_v55 }
 0x16e   :  { %v203_v56 = vpop.xlane.xlu1 %202  ;;  %v200_v57 = vpop.xlane.xlu0 %199 }
 0x16f   :  { %v207_v60 = vmax.f32 %v191_v52, %v203_v56  ;;  %v206_v61 = vmax.f32 %v188_v54, %v200_v57 }
 0x171   :  { %v209_v62 = vmax.f32 %v205_v58, %v207_v60  ;;  %v208_v63 = vmax.f32 %v204_v59, %v206_v61 }
 0x173   :  { %v210_v0 = vmax.f32 %v208_v63, %v209_v62 }
 0x175   :  { %v211_v1 = vsub.f32 %v182_v53, %v210_v0  ;;  %v212_v2 = vsub.f32 %v185_v51, %v210_v0  ;;  %v213_v3 = vsub.f32 %v188_v54, %v210_v0  ;;  %v214_v4 = vsub.f32 %v191_v52, %v210_v0 }
 0x176   :  { %v215_v5 = vsub.f32 %v194_v55, %v210_v0  ;;  %v216_v6 = vsub.f32 %v197_v50, %v210_v0  ;;  %v217_v7 = vsub.f32 %v200_v57, %v210_v0  ;;  %v218_v11 = vsub.f32 %v203_v56, %v210_v0 }
 0x177   :  { %v219_v8 = vmul.f32 1.442695, %v211_v1  ;;  %v221_v9 = vmul.f32 1.442695, %v212_v2  ;;  %v223_v10 = vmul.f32 1.442695, %v213_v3 }
 0x178   :  { %v225_v12 = vmul.f32 1.442695, %v214_v4  ;;  %v227_v13 = vmul.f32 1.442695, %v215_v5  ;;  %v229_v14 = vmul.f32 1.442695, %v216_v6 }
 0x179   :  { %333 = vpow2.f32 %v219_v8  ;;  %v231_v15 = vmul.f32 1.442695, %v217_v7  ;;  %v233_v16 = vmul.f32 1.442695, %v218_v11 }
 0x17a   :  { %335 = vpow2.f32 %v221_v9 }
 0x17b   :  { %337 = vpow2.f32 %v223_v10 }
 0x17c   :  { %339 = vpow2.f32 %v225_v12 }
 0x17d   :  { %341 = vpow2.f32 %v227_v13 }
 0x17e   :  { %343 = vpow2.f32 %v229_v14 }
 0x17f   :  { %345 = vpow2.f32 %v231_v15 }
 0x180   :  { %347 = vpow2.f32 %v233_v16 }
 0x186   :  { %v334_v17 = vpop.eup %333 }
 0x187   :  { %v336_v18 = vpop.eup %335  ;;  %v242_v39 = vmul.f32 %v334_v17, %v442_v24 }
 0x188   :  { %v338_v19 = vpop.eup %337  ;;  %v243_v41 = vmul.f32 %v336_v18, %v438_v20 }
 0x189   :  { %v340_v22 = vpop.eup %339  ;;  %v244_v42 = vmul.f32 %v338_v19, %v453_v36 }
 0x18a   :  { %v342_v23 = vpop.eup %341  ;;  %v245_v43 = vmul.f32 %v340_v22, %v448_v30 }
 0x18b   :  { %v344_v25 = vpop.eup %343  ;;  %v235_v26 = vadd.f32 %v342_v23, %v334_v17  ;;  %v246_v44 = vmul.f32 %v342_v23, %v446_v27 }
 0x18c   :  { %v346_v28 = vpop.eup %345  ;;  %v236_v29 = vadd.f32 %v344_v25, %v336_v18  ;;  %v247_v45 = vmul.f32 %v344_v25, %v440_v21 }
 0x18d   :  { %v348_v31 = vpop.eup %347  ;;  %v237_v32 = vadd.f32 %v346_v28, %v338_v19  ;;  %v248_v46 = vmul.f32 %v346_v28, %v459_v40  ;;  %v250_v48 = vadd.f32 %v246_v44, %v242_v39 }
 0x18e   :  { %v238_v33 = vadd.f32 %v348_v31, %v340_v22  ;;  %v249_v47 = vmul.f32 %v348_v31, %v456_v38  ;;  %v251_v49 = vadd.f32 %v247_v45, %v243_v41 }
 0x18f   :  { %v239_v34 = vadd.f32 %v237_v32, %v235_v26  ;;  %v252_v50 = vadd.f32 %v248_v46, %v244_v42 }
 0x190   :  { %v240_v35 = vadd.f32 %v238_v33, %v236_v29  ;;  %v253_v51 = vadd.f32 %v249_v47, %v245_v43 }
 0x191   :  { %v254_v24 = vadd.f32 %v252_v50, %v250_v48 }
 0x192   :  { %v241_v37 = vadd.f32 %v240_v35, %v239_v34  ;;  %v255_v52 = vadd.f32 %v253_v51, %v251_v49 }
 0x194   :  { %349 = vrcp.f32 %v241_v37  ;;  %v256_v20 = vadd.f32 %v255_v52, %v254_v24 }
 0x1a1   :  { %v350_v53 = vpop.eup %349 }
 0x1a2   :  { %v258_v36 = vmul.f32 %v350_v53, %v256_v20 }
 0x1a4   :  { %259 = vst.msk [vmem:[%s486_s4] sm:$0xff] %vm179_vm1, %v258_v36 }

</bundles_post_ra>
